<compile_context>
chip_gen: v7x
topology: tpu7x:2x2x1
jax: 0.10.0
libtpu: 0.0.40
codegen_flags: <defaults>
</compile_context>

<pallas_src>
from typing import NamedTuple

import jax
import jax.numpy as jnp
from jax.experimental import pallas as pl
from jax.experimental.pallas import tpu as pltpu


class SparseMat(NamedTuple):
    """JAX stand-in for the repo's SparseMat container (pure metadata glue)."""
    values: jax.Array        # [nnz, d]
    indices: jax.Array       # [2, nnz]
    cam_per_pts: jax.Array
    pts_per_cam: jax.Array
    shape: tuple             # (n_cam, n_pts, d)


def _round_up(x: int, m: int) -> int:
    return ((x + m - 1) // m) * m


def _sublane_req(dtype) -> int:
    # Second-to-last block dim must be a multiple of this (8 for f32, 16 for bf16).
    return max(8, 32 // jnp.dtype(dtype).itemsize)


def _pick_fold(d_in: int, d_out: int, max_fold: int = 16) -> int:
    """Smallest row-fold making both fold*d_in and fold*d_out multiples of 128."""
    for f in range(1, max_fold + 1):
        if (f * d_in) % 128 == 0 and (f * d_out) % 128 == 0:
            return f
    # TODO(synk): no small lane-dense fold for these dims; fall back to the
    # unfolded (correct but layout-suboptimal) path.
    return 1


# ----------------------------------------------------------------------------
# Pallas kernel: row-tiled Linear  (values @ W + b), f32 accumulate on MXU.
# ----------------------------------------------------------------------------
def _proj_kernel(v_ref, w_ref, b_ref, o_ref):
    # v_ref: (tm, K)   w_ref: (K, M)   b_ref: (1, M) f32   o_ref: (tm, M)
    acc = jnp.dot(v_ref[...], w_ref[...], preferred_element_type=jnp.float32)
    o_ref[...] = (acc + b_ref[...]).astype(o_ref.dtype)


def proj_linear(values: jax.Array, w_bd: jax.Array, b_bd: jax.Array,
                *, fold: int, d_out: int, tm_rows: int = 16384,
                out_dtype=None) -> jax.Array:
    """Lane-dense Linear: (values folded to [N/fold, fold*d_in]) @ block-diag(W).

    values: [N, d_in]                      (left in its native dtype, no cast pass)
    w_bd:   [fold*d_in, fold*d_out]        (block-diagonal weight, VMEM-resident)
    b_bd:   [1, fold*d_out] f32            (bias tiled fold times)
    tm_rows: row tile in ORIGINAL rows (sweepable).
    """
    N, d_in = values.shape
    out_dtype = out_dtype if out_dtype is not None else values.dtype
    if N == 0:
        return jnp.zeros((0, d_out), out_dtype)

    K = fold * d_in
    M = fold * d_out
    assert w_bd.shape == (K, M) and b_bd.shape == (1, M)

    # Fold rows `fold`-at-a-time into lane-dense rows: free view of contiguous
    # row-major HBM.  Only a (< fold)-row pad is needed when N % fold != 0.
    n8 = _round_up(N, fold)
    if n8 != N:
        # TODO(synk): this tiny pad still materializes a copy of `values` via
        # jnp.pad; only taken when nnz is not a multiple of `fold`.
        values = jnp.pad(values, ((0, n8 - N), (0, 0)))
    n_fold = n8 // fold
    v_fold = values.reshape(n_fold, K)

    in_item = jnp.dtype(values.dtype).itemsize
    out_item = jnp.dtype(out_dtype).itemsize
    w_item = jnp.dtype(w_bd.dtype).itemsize
    row_align = max(_sublane_req(values.dtype), _sublane_req(out_dtype))

    # Tile sizing: large tiles toward the HBM roofline, VMEM-capped so the
    # in+out double buffers stay well under v7x's 64 MiB, and grid >= 2 whenever
    # there is enough work so both v7x TensorCores are used and the software
    # pipeline has something to overlap.
    per_row_bytes = K * in_item + M * out_item
    vmem_cap_rows = max(row_align,
                        ((12 * 1024 * 1024) // per_row_bytes) // row_align * row_align)
    tm_fold_max = max(row_align,
                      (max(int(tm_rows), fold) // fold) // row_align * row_align)
    tm_fold_max = min(tm_fold_max, vmem_cap_rows)

    g = pl.cdiv(n_fold, tm_fold_max)
    if g < 2 and n_fold >= 2 * row_align:
        g = 2
    tm_fold = min(_round_up(pl.cdiv(n_fold, g), row_align), tm_fold_max)
    grid = (pl.cdiv(n_fold, tm_fold),)   # ragged last block handled by Pallas

    cost = pl.CostEstimate(
        flops=2 * n_fold * K * M,
        transcendentals=0,
        bytes_accessed=(n_fold * K * in_item + n_fold * M * out_item
                        + K * M * w_item + M * 4),
    )

    out_fold = pl.pallas_call(
        _proj_kernel,
        out_shape=jax.ShapeDtypeStruct((n_fold, M), out_dtype),
        grid_spec=pltpu.PrefetchScalarGridSpec(
            num_scalar_prefetch=0,
            grid=grid,
            in_specs=[
                # Streamed lane-dense row tile of values.
                pl.BlockSpec((tm_fold, K), lambda i: (i, 0)),
                # Block-diagonal weight / bias: constant index_map -> VMEM-resident.
                pl.BlockSpec((K, M), lambda i: (0, 0)),
                pl.BlockSpec((1, M), lambda i: (0, 0)),
            ],
            out_specs=pl.BlockSpec((tm_fold, M), lambda i: (i, 0)),
        ),
        compiler_params=pltpu.CompilerParams(
            dimension_semantics=("parallel",),      # megacore / v7x 2-TC sharding
            vmem_limit_bytes=32 * 1024 * 1024,      # safe on v5e/v6e/v7x; usage ~<12 MiB
        ),
        cost_estimate=cost,
    )(v_fold, w_bd, b_bd)

    out = out_fold.reshape(n_fold * fold, d_out)
    if n_fold * fold != N:
        out = out[:N]          # drop the (<fold) padded rows (they hold bias, not zeros)
    return out


# ----------------------------------------------------------------------------
# ProjLayer wrapper (mirrors the PyTorch module's forward)
# ----------------------------------------------------------------------------
class ProjLayer:
    def __init__(self, d_in: int, d_out: int, key: jax.Array,
                 *, out_dtype=jnp.float32, tm_rows: int = 16384):
        # torch.nn.Linear default init: U(-1/sqrt(d_in), 1/sqrt(d_in)) for W and b.
        kw, kb = jax.random.split(key)
        bound = float(1.0 / (d_in ** 0.5))
        w = jax.random.uniform(kw, (d_out, d_in), jnp.float32, -bound, bound)
        b = jax.random.uniform(kb, (d_out,), jnp.float32, -bound, bound)

        self.d_in, self.d_out = d_in, d_out
        self.w_t = jnp.asarray(w.T)     # [d_in, d_out] f32 master weight
        self.b = b                      # [d_out] f32
        self.out_dtype = out_dtype
        self.tm_rows = tm_rows

        # One-time lane-dense prep (cached; no per-call casts/copies).
        self.fold = _pick_fold(d_in, d_out)
        w_bd = jnp.zeros((self.fold * d_in, self.fold * d_out), jnp.float32)
        for i in range(self.fold):
            w_bd = w_bd.at[i * d_in:(i + 1) * d_in,
                           i * d_out:(i + 1) * d_out].set(self.w_t)
        self.w_bd = w_bd                                        # [fold*d_in, fold*d_out]
        self.b_bd = jnp.tile(b, self.fold).reshape(1, self.fold * d_out)  # f32

    def __call__(self, x: SparseMat) -> SparseMat:
        new_features = proj_linear(x.values, self.w_bd, self.b_bd,
                                   fold=self.fold, d_out=self.d_out,
                                   tm_rows=self.tm_rows, out_dtype=self.out_dtype)
        new_shape = (x.shape[0], x.shape[1], new_features.shape[1])
        return SparseMat(new_features, x.indices, x.cam_per_pts,
                         x.pts_per_cam, new_shape)


if __name__ == "__main__":
    key = jax.random.PRNGKey(0)
    k_vals, k_idx, k_layer = jax.random.split(key, 3)

    # Small synthetic SparseMat: 2 cameras, 16 points, nnz=1000, d_in=32, d_out=48.
    n_cam, n_pts, nnz, d_in, d_out = 2, 16, 1000, 32, 48

    values = jax.random.normal(k_vals, (nnz, d_in), jnp.float32)
    indices = jax.random.randint(k_idx, (2, nnz), 0, n_pts, jnp.int32)
    cam_per_pts = jnp.ones((n_pts, 1), jnp.int32) * n_cam
    pts_per_cam = jnp.ones((n_cam, 1), jnp.int32) * n_pts
    x = SparseMat(values, indices, cam_per_pts, pts_per_cam, (n_cam, n_pts, d_in))

    # --- f32 path (exact check; nnz=1000 folds to 125 rows -> 2-step grid,
    #     ragged last block exercised) -------------------------------------
    layer = ProjLayer(d_in, d_out, k_layer)
    out = layer(x)
    jax.block_until_ready(out.values)

    ref = values @ layer.w_t + layer.b
    assert out.values.shape == (nnz, d_out)
    assert out.shape == (n_cam, n_pts, d_out)
    assert jnp.allclose(out.values, ref, atol=1e-5, rtol=1e-5)

    # --- nnz not a multiple of the fold (exercises the tiny pad path) -------
    nnz2 = 997
    x2 = SparseMat(values[:nnz2], indices[:, :nnz2], cam_per_pts, pts_per_cam,
                   (n_cam, n_pts, d_in))
    out2 = layer(x2)
    jax.block_until_ready(out2.values)
    assert out2.values.shape == (nnz2, d_out)
    assert jnp.allclose(out2.values, ref[:nnz2], atol=1e-5, rtol=1e-5)

    # --- bf16-OUTPUT-only path (f32 inputs/accumulation, bf16 writeback) -----
    layer_bf16 = ProjLayer(d_in, d_out, k_layer, out_dtype=jnp.bfloat16)
    out_bf16 = layer_bf16(x)
    jax.block_until_ready(out_bf16.values)
    assert out_bf16.values.dtype == jnp.bfloat16
    assert out_bf16.values.shape == (nnz, d_out)
    assert jnp.allclose(out_bf16.values.astype(jnp.float32),
                        ref.astype(jnp.bfloat16).astype(jnp.float32),
                        atol=5e-2, rtol=5e-2)

    print("KERNEL_OK")
</pallas_src>

<mosaic_0001>
module attributes {stable_mosaic.version = 11 : i64} {
  func.func @_proj_kernel(%arg0: i32, %arg1: memref<64x256xf32, #tpu.memory_space<vmem>>, %arg2: memref<256x384xf32, #tpu.memory_space<vmem>>, %arg3: memref<1x384xf32, #tpu.memory_space<vmem>>, %arg4: memref<64x384xf32, #tpu.memory_space<vmem>>) attributes {dimension_semantics = [#tpu.dimension_semantics<parallel>], iteration_bounds = array<i64: 2>, scalar_prefetch = 0 : i64, scratch_operands = 0 : i64, tpu.core_type = #tpu.core_type<tc>, window_params = [{transform_indices = @transform_0, window_bounds = array<i64: 64, 256>}, {pipeline_mode = #tpu.pipeline_mode<synchronous>, transform_indices = @transform_1, window_bounds = array<i64: 256, 384>}, {pipeline_mode = #tpu.pipeline_mode<synchronous>, transform_indices = @transform_2, window_bounds = array<i64: 1, 384>}, {transform_indices = @transform_3, window_bounds = array<i64: 64, 384>}]} {
    %c0 = arith.constant 0 : index
    %c0_0 = arith.constant 0 : index
    %0 = vector.load %arg1[%c0, %c0_0] : memref<64x256xf32, #tpu.memory_space<vmem>>, vector<64x256xf32>
    %c0_1 = arith.constant 0 : index
    %c0_2 = arith.constant 0 : index
    %1 = vector.load %arg2[%c0_1, %c0_2] : memref<256x384xf32, #tpu.memory_space<vmem>>, vector<256x384xf32>
    %cst = arith.constant dense<0.000000e+00> : vector<64x384xf32>
    %2 = tpu.matmul %0, %1, %cst {dimension_numbers = #tpu.dot_dimension_numbers<[1], [0], [0], [1], [0, 0, 1, 1], [], []>} : vector<64x256xf32>, vector<256x384xf32>, vector<64x384xf32> -> vector<64x384xf32>
    %c0_3 = arith.constant 0 : index
    %c0_4 = arith.constant 0 : index
    %3 = vector.load %arg3[%c0_3, %c0_4] : memref<1x384xf32, #tpu.memory_space<vmem>>, vector<1x384xf32>
    %4 = vector.broadcast %3 : vector<1x384xf32> to vector<64x384xf32>
    %5 = arith.addf %2, %4 : vector<64x384xf32>
    %c0_5 = arith.constant 0 : index
    %c0_6 = arith.constant 0 : index
    %6 = vector.load %arg4[%c0_5, %c0_6] : memref<64x384xf32, #tpu.memory_space<vmem>>, vector<64x384xf32>
    tpu.vector_store %arg4[%c0_5, %c0_6], %5 {strides = array<i32>} : memref<64x384xf32, #tpu.memory_space<vmem>>, vector<64x384xf32>,
    return
  }
  func.func @transform_0(%arg0: i32) -> (i32, i32) {
    %c0_i32 = arith.constant 0 : i32
    %c0_i32_0 = arith.constant 0 : i32
    return %arg0, %c0_i32 : i32, i32
  }
  func.func @transform_1(%arg0: i32) -> (i32, i32) {
    %c0_i32 = arith.constant 0 : i32
    %c0_i32_0 = arith.constant 0 : i32
    %c0_i32_1 = arith.constant 0 : i32
    return %c0_i32, %c0_i32_0 : i32, i32
  }
  func.func @transform_2(%arg0: i32) -> (i32, i32) {
    %c0_i32 = arith.constant 0 : i32
    %c0_i32_0 = arith.constant 0 : i32
    %c0_i32_1 = arith.constant 0 : i32
    return %c0_i32, %c0_i32_0 : i32, i32
  }
  func.func @transform_3(%arg0: i32) -> (i32, i32) {
    %c0_i32 = arith.constant 0 : i32
    %c0_i32_0 = arith.constant 0 : i32
    return %arg0, %c0_i32 : i32, i32
  }
}

</mosaic_0001>

<bundles_post_ra>
// kernel: tpu_custom_call.1
= control target key start
LH: loop header
LB: loop body
LE: loop exit
PB: predicated region body
PF: predicated region fallthrough
CT: control target
= control target key end

     0   :  { %8 = vsyncpa [#allocation3], 0  ;;  %s1340_s0 = inlined_call_operand.hbm [shape: f32[125,256], index: 0, kind: input, shape index: {}]   ;;  %s1341_s1 = inlined_call_operand.hbm [shape: f32[256,384], index: 1, kind: input, shape index: {}]   ;;  %s1342_s2 = inlined_call_operand.vmem [shape: f32[1,384], index: 2, kind: input, shape index: {}]   ;;  %s1343_s3 = inlined_call_operand.hbm [shape: f32[125,384], index: 3, kind: output, shape index: {}]  }
   0x1   :  { %10 = vsyncpa [#allocation3 + $0x1], 0 }
   0x2   :  { %11 = vsyncpa [#allocation6], 0 }
   0x3   :  { %12 = vsyncpa [#allocation4], 0 }
   0x4   :  { %14 = vsyncpa [#allocation4 + $0x1], 0  ;;  %s1070_s12 = smov 0   ;;  %s1072_s13 = smov 0  }
   0x5   :  { %s1074_s14 = smov 0   ;;  %s1076_s15 = smov 0  }
   0x6 LB: > { %s1091_s16 = sadd.s32 4294967295, %s1039_s15   ;;  %s676_s17 = sadd.s32 4294967294, %s1039_s15   ;;  %s1039_s15 = sphi %s1076_s15, %s1363_s15   ;;  %s1035_s14 = sphi %s1074_s14, %s1362_s14   ;;  %s1031_s13 = sphi %s1072_s13, %s1361_s13   ;;  %s1027_s12 = sphi %s1070_s12, %s1360_s12  }
   0x7   : > { %p40_p0 = scmp.ne.s32.totalorder %s1031_s13, %s1027_s12  ;;  %p1344_p1 = scmp.eq.s32.totalorder %s1091_s16, 0 }
   0x8   : > { %p112_p3 = scmp.eq.s32.totalorder %s676_s17, 1  ;;  %p677_p5 = scmp.ge.s32.totalorder %s1039_s15, 1 }
   0x9   : > { %p1100_p4 = por %p1344_p1, %p40_p0  ;;  %p119_p7 = scmp.lt.s32.totalorder %s1039_s15, 3 }
   0xa   : > { %p1105_p6 = por %p112_p3, %p40_p0  ;;  %s1041_s21 = smov [#allocation5]  }
   0xb   : > { %s1347_s18 = scalar_select %p1100_p4, 1, 0 }
   0xc   : > { %s1348_s19 = scalar_select %p1105_p6, 1, 0 }
   0xd   : > { %p1110_p8 = pnand %p677_p5, %p119_p7  ;;  %s131_s22 = sshll.u32 %s1041_s21, 4  ;;  %s1114_s22 = int_to_ptr.vmem [resolvable:$true] %s131_s22 }
   0xe   : > { %s1126_s24 = sadd.s32 1, %s1039_s15   ;;  %s27_s25 = sadd.s32 1, %s1035_s14 }
   0xf   : > { %s1349_s20 = scalar_select %p1110_p8, 1, 0 }
  0x10   : > { %p856_p9 = pneg %p1110_p8  ;;  %s24_s26 = ssub.s32 %s1039_s15, %s1126_s24 }
  0x11   : > { %s911_s29 = scalar_lea.hbm %s1341_s1, 12288 }
  0x12   : > { %p1121_p11 = pnand %p856_p9, %p1344_p1  ;;  %p912_p12 = scmp.ne.s32.totalorder %s1341_s1, %s911_s29 }
  0x13   : > { %p918_p5 = scmp.lt.u32.totalorder %s911_s29, %s1341_s1 }
  0x14   : > { %p913_p13 = pneg %p1121_p11 }
  0x16   : > { %p914_p0 = pnand %p913_p13, %p912_p12 }
  0x18   : > { %p915_p3 = pneg %p914_p0 }
  0x1a   : > { %p920_p7 = pnand %p918_p5, %p915_p3 }
  0x1c   : > { %923 = shalt.err (!%p920_p7)
}
  0x1d   : > { %s924_s7 = scalar_lea.vmem %s1114_s22, 12288  ;;  %p932_p2 = scmp.lt.s32.totalorder %s1114_s22, %s1114_s22 }
  0x1e   : > { %p925_p9 = scmp.ne.s32.totalorder %s1114_s22, %s924_s7  ;;  %p933_p6 = scmp.lt.s32.totalorder %s924_s7, %s924_s7 }
  0x20   : > { %p927_p10 = pnand %p925_p9, %p913_p13  ;;  %p934_p4 = por %p933_p6, %p932_p2 }
  0x22   : > { %p928_p1 = pneg %p927_p10 }
  0x24   : > { %p935_p8 = pnand %p934_p4, %p928_p1 }
  0x26   : > { %938 = shalt.err (!%p935_p8)
}
  0x27   : > { %s1042_s8 = smov 384   ;;  %s1043_s9 = smov 24  }
  0x28   : > { %859 = dma.hbm_to_vmem [thread:$0]  (!%p1121_p11), %s1341_s1, 12288, %s1114_s22, [#allocation6], %s1042_s8, %s1042_s8, %s1043_s9  }
  0x29   : > { %p25_p2 = scmp.eq.s32.totalorder %s24_s26, 0  ;;  %p34_p1 = scmp.ne.s32.totalorder %s1035_s14, %s1031_s13 }
  0x2a   : > { %p35_p4 = scmp.eq.s32.totalorder %s1039_s15, 0  ;;  %p869_p6 = scmp.lt.s32.totalorder %s1039_s15, 2 }
  0x2b   : > { %s1157_s17 = scalar_select %p25_p2, %s1035_s14, %s27_s25  }
  0x2c   : > { %p36_p8 = por %p35_p4, %p34_p1  ;;  %p1351_p10 = scmp.eq.s32.totalorder %s1091_s16, 1 }
  0x2d   : > { %s148_s27 = sand.u32 1, %s1035_s14   ;;  %s693_s28 = sshll.u32 %s1039_s15, 11 }
  0x2e   : > { %p1161_p12 = por %p1351_p10, %p34_p1  ;;  %s680_s29 = sshll.u32 %s148_s27, 7 }
  0x2f   : > { %s1170_s4 = scalar_lea.hbm %s1340_s0, %s693_s28  ;;  %s152_s22 = scalar_lea.vmem [#allocation2], %s680_s29 }
  0x30   : > { %s160_s25 = sshll.u32 %s152_s22, 4  ;;  %p1172_p11 = pnand %p869_p6, %p36_p8  ;;  %s1176_s25 = int_to_ptr.vmem [resolvable:$true] %s160_s25 }
  0x31   : > { %s1178_s5 = scalar_lea.sflag [#allocation3], %s148_s27  ;;  %s939_s6 = scalar_lea.hbm %s1170_s4, 2048 }
  0x32   : > { %p940_p13 = scmp.ne.s32.totalorder %s1170_s4, %s939_s6  ;;  %p941_p0 = pneg %p1172_p11 }
  0x33   : > { %s944_s9 = scalar_lea.hbm %s1340_s0, 4096  ;;  %p945_p7 = scmp.lt.u32.totalorder %s1170_s4, %s1340_s0 }
  0x34   : > { %p942_p3 = pnand %p941_p0, %p940_p13  ;;  %p946_p9 = scmp.lt.u32.totalorder %s944_s9, %s939_s6 }
  0x35   : > { %p948_p1 = scmp.lt.u32.totalorder %s939_s6, %s1170_s4 }
  0x36   : > { %p943_p5 = pneg %p942_p3  ;;  %p947_p2 = por %p946_p9, %p945_p7 }
  0x38   : > { %p949_p4 = por %p948_p1, %p947_p2 }
  0x3a   : > { %p950_p6 = pnand %p949_p4, %p943_p5 }
  0x3c   : > { %953 = shalt.err (!%p950_p6)
}
  0x3d   : > { %s954_s27 = scalar_lea.vmem %s1176_s25, 2048  ;;  %s1044_s28 = smov [#allocation2]  }
  0x3e   : > { %p955_p8 = scmp.ne.s32.totalorder %s1176_s25, %s954_s27  ;;  %s959_s29 = sshll.u32 %s1044_s28, 4  ;;  %s960_s29 = int_to_ptr.vmem [resolvable:$false] %s959_s29 }
  0x3f   : > { %s961_s23 = scalar_lea.vmem %s960_s29, 4096  ;;  %p962_p3 = scmp.lt.s32.totalorder %s1176_s25, %s960_s29 }
  0x40   : > { %p957_p10 = pnand %p955_p8, %p941_p0  ;;  %p963_p7 = scmp.lt.s32.totalorder %s961_s23, %s954_s27 }
  0x42   : > { %p958_p13 = pneg %p957_p10  ;;  %p964_p9 = por %p963_p7, %p962_p3 }
  0x44   : > { %p965_p2 = pnand %p964_p9, %p958_p13 }
  0x46   : > { %968 = shalt.err (!%p965_p2)
}
  0x47   : > { %s1045_s30 = smov 256   ;;  %s1046_s22 = smov 16  }
  0x48   : > { %863 = dma.hbm_to_vmem [thread:$0]  (!%p1172_p11), %s1170_s4, 2048, %s1176_s25, %s1178_s5, %s1045_s30, %s1045_s30, %s1046_s22  }
  0x49   : > { %p1354_p0 = scmp.ne.s32.totalorder %s1349_s20, 0 }
  0x4a   : > { %s1209_s6 = sand.u32 (!%p1354_p0), 1, %s1031_s13   ;;  %p1355_p5 = scmp.ne.s32.totalorder (!%p1354_p0), %s1347_s18, 0 }
  0x4b   : > { %172 = sbr.rel (%p1354_p0) target bundleno = 411 (0x19b), region = 32  ;;  %s685_s7 = sshll.u32 (!%p1354_p0), %s1209_s6, 7 }
  0x4c   : > { %s175_s8 = scalar_lea.sflag (!%p1354_p0), [#allocation3], %s1209_s6  ;;  %s1213_s9 = scalar_lea.vmem (!%p1354_p0), [#allocation2], %s685_s7 }
  0x52   : > { %1014 = dma.done.wait (%p1355_p5), %s175_s8, 2048  }
  0x53   : > { %1016 = vsyncadd (%p1355_p5), %s175_s8, 4294965248  ;;  %p1356_p11 = scmp.eq.s32.totalorder %s1091_s16, 0 }
  0x55   : > { %1018 = dma.done.wait (%p1356_p11), [#allocation6], 12288   ;;  %p1357_p1 = pmov %p1356_p11 }
  0x56   : > { %v224_v0 = vld [vmem:[#allocation5 + $0x8] sm:$0xff]  ;;  %v227_v1 = vld [vmem:[#allocation5 + $0x20] sm:$0xff]  ;;  %v226_v4 = vld [vmem:[#allocation5 + $0x18] sm:$0xff]  ;;  %s846_s4 = smul.u32 192, %s1209_s6  ;;  %s1047_s29 = smov [#allocation7]  }
  0x57   : > { %1020 = vsyncadd (%p1357_p1), [#allocation6], 4294955008  ;;  %v223_v2 = vld [vmem:[#allocation5] sm:$0xff]  ;;  %v750_v3 = vpack.c.bf16 %v227_v1, %v224_v0  ;;  %v230_v5 = vld [vmem:[#allocation5 + $0x38] sm:$0xff]  ;;  %s847_s26 = smul.u32 3072, %s1091_s16  ;;  %s579_s16 = scalar_lea.sflag [#allocation4], %s1209_s6 }
  0x58   : > { %v233_v6 = vld [vmem:[#allocation5 + $0x50] sm:$0xff]  ;;  %v752_v7 = vpack.c.bf16 %v226_v4, %v223_v2  ;;  %v232_v10 = vld [vmem:[#allocation5 + $0x48] sm:$0xff]  ;;  %v239_v12 = vld [vmem:[#allocation5 + $0x80] sm:$0xff]  ;;  %s1243_s25 = scalar_lea.vmem [#allocation7], %s846_s4  ;;  %s973_s23 = sshll.u32 %s1047_s29, 4  ;;  %s974_s23 = int_to_ptr.vmem [resolvable:$false] %s973_s23 }
  0x59   : > { %v754_v8 = vpack.c.bf16 %v233_v6, %v230_v5  ;;  %v229_v9 = vld [vmem:[#allocation5 + $0x30] sm:$0xff]  ;;  %v236_v11 = vld [vmem:[#allocation5 + $0x68] sm:$0xff]  ;;  %751 = vmatprep.subr.bf16.mxu0 %v750_v3  ;;  %v235_v15 = vld [vmem:[#allocation5 + $0x60] sm:$0xff]  ;;  %s593_s5 = sshll.u32 %s1243_s25, 4  ;;  %s1291_s27 = scalar_lea.hbm %s1343_s3, %s847_s26  ;;  %s1293_s5 = int_to_ptr.vmem [resolvable:$true] %s593_s5 }
  0x5a   : > { %753 = vmatpush1.bf16.msra.mxu0 %v752_v7  ;;  %v756_v13 = vpack.c.bf16 %v232_v10, %v229_v9  ;;  %v758_v14 = vpack.c.bf16 %v239_v12, %v236_v11  ;;  %v238_v16 = vld [vmem:[#allocation5 + $0x78] sm:$0xff]  ;;  %v245_v18 = vld [vmem:[#allocation5 + $0xb0] sm:$0xff]  ;;  %v244_v22 = vld [vmem:[#allocation5 + $0xa8] sm:$0xff]  ;;  %s969_s28 = scalar_lea.vmem %s1293_s5, 3072  ;;  %s975_s30 = scalar_lea.vmem %s974_s23, 6144 }
  0x5b   : > { %755 = vmatprep.subr.bf16.mxu0 %v754_v8  ;;  %v242_v17 = vld [vmem:[#allocation5 + $0x98] sm:$0xff]  ;;  %v760_v19 = vpack.c.bf16 %v238_v16, %v235_v15  ;;  %v241_v21 = vld [vmem:[#allocation5 + $0x90] sm:$0xff]  ;;  %v248_v23 = vld [vmem:[#allocation5 + $0xc8] sm:$0xff]  ;;  %p970_p4 = scmp.ne.s32.totalorder %s1293_s5, %s969_s28  ;;  %p976_p10 = scmp.lt.s32.totalorder %s1293_s5, %s974_s23 }
  0x5c   : > { %v762_v20 = vpack.c.bf16 %v245_v18, %v242_v17  ;;  %v251_v24 = vld [vmem:[#allocation5 + $0xe0] sm:$0xff]  ;;  %v273_v25 = vld [vmem:[#allocation5 + $0x190] sm:$0xff]  ;;  %v276_v26 = vld [vmem:[#allocation5 + $0x1a8] sm:$0xff]  ;;  %v764_v29 = vpack.c.bf16 %v244_v22, %v241_v21  ;;  %p977_p13 = scmp.lt.s32.totalorder %s975_s30, %s969_s28 }
  0x5d   : > { %v225_v27 = vld [vmem:[#allocation5 + $0x10] sm:$0xff]  ;;  %v228_v28 = vld [vmem:[#allocation5 + $0x28] sm:$0xff]  ;;  %v247_v30 = vld [vmem:[#allocation5 + $0xc0] sm:$0xff]  ;;  %v814_v32 = vpack.c.bf16 %v276_v26, %v273_v25  ;;  %v766_v34 = vpack.c.bf16 %v251_v24, %v248_v23  ;;  %p971_p6 = pnand %p970_p4, %p1161_p12 }
  0x5e   : > { %757 = vmatpush1.bf16.msra.mxu0 %v756_v13  ;;  %v250_v31 = vld [vmem:[#allocation5 + $0xd8] sm:$0xff]  ;;  %v816_v33 = vpack.c.bf16 %v228_v28, %v225_v27  ;;  %v279_v36 = vld [vmem:[#allocation5 + $0x1c0] sm:$0xff]  ;;  %v257_v38 = vld [vmem:[#allocation5 + $0x110] sm:$0xff]  ;;  %p978_p3 = por %p977_p13, %p976_p10 }
  0x5f   : > { %759 = vmatprep.subr.bf16.mxu0 %v758_v14  ;;  %v254_v35 = vld [vmem:[#allocation5 + $0xf8] sm:$0xff]  ;;  %815 = vmatprep.subr.bf16.mxu1 %v814_v32  ;;  %v231_v40 = vld [vmem:[#allocation5 + $0x40] sm:$0xff]  ;;  %v768_v43 = vpack.c.bf16 %v250_v31, %v247_v30  ;;  %v285_v44 = vld [vmem:[#allocation5 + $0x1f0] sm:$0xff]  ;;  %p972_p8 = pneg %p971_p6 }
  0x60   : > { %v282_v37 = vld [vmem:[#allocation5 + $0x1d8] sm:$0xff]  ;;  %817 = vmatpush3.bf16.msra.mxu1 %v816_v33  ;;  %v288_v45 = vld [vmem:[#allocation5 + $0x208] sm:$0xff]  ;;  %v237_v46 = vld [vmem:[#allocation5 + $0x70] sm:$0xff]  ;;  %v770_v47 = vpack.c.bf16 %v257_v38, %v254_v35 }
  0x61   : > { %v818_v39 = vpack.c.bf16 %v282_v37, %v279_v36  ;;  %v234_v41 = vld [vmem:[#allocation5 + $0x58] sm:$0xff]  ;;  %v253_v48 = vld [vmem:[#allocation5 + $0xf0] sm:$0xff]  ;;  %v256_v49 = vld [vmem:[#allocation5 + $0x108] sm:$0xff]  ;;  %v822_v50 = vpack.c.bf16 %v288_v45, %v285_v44  ;;  %p979_p7 = pnand %p978_p3, %p972_p8 }
  0x62   : > { %761 = vmatpush1.bf16.msra.mxu0 %v760_v19  ;;  %v820_v42 = vpack.c.bf16 %v234_v41, %v231_v40  ;;  %v240_v51 = vld [vmem:[#allocation5 + $0x88] sm:$0xff]  ;;  %v263_v53 = vld [vmem:[#allocation5 + $0x140] sm:$0xff]  ;;  %v294_v56 = vld [vmem:[#allocation5 + $0x238] sm:$0xff]  ;;  %v772_v57 = vpack.c.bf16 %v256_v49, %v253_v48 }
  0x63   : > { %763 = vmatprep.subr.bf16.mxu0 %v762_v20  ;;  %819 = vmatprep.subr.bf16.mxu1 %v818_v39  ;;  %v260_v52 = vld [vmem:[#allocation5 + $0x128] sm:$0xff]  ;;  %v291_v54 = vld [vmem:[#allocation5 + $0x220] sm:$0xff]  ;;  %v824_v55 = vpack.c.bf16 %v240_v51, %v237_v46  ;;  %v246_v61 = vld [vmem:[#allocation5 + $0xb8] sm:$0xff] }
  0x64   : > { %821 = vmatpush3.bf16.msra.mxu1 %v820_v42  ;;  %v259_v58 = vld [vmem:[#allocation5 + $0x120] sm:$0xff]  ;;  %v826_v59 = vpack.c.bf16 %v294_v56, %v291_v54  ;;  %v774_v62 = vpack.c.bf16 %v263_v53, %v260_v52  ;;  %v262_v63 = vld [vmem:[#allocation5 + $0x138] sm:$0xff]  ;;  %v297_v0 = vld [vmem:[#allocation5 + $0x250] sm:$0xff] }
  0x65   : > { %823 = vmatprep.subr.bf16.mxu1 %v822_v50  ;;  %v243_v60 = vld [vmem:[#allocation5 + $0xa0] sm:$0xff]  ;;  %v300_v1 = vld [vmem:[#allocation5 + $0x268] sm:$0xff]  ;;  %v266_v2 = vld [vmem:[#allocation5 + $0x158] sm:$0xff]  ;;  %v776_v5 = vpack.c.bf16 %v262_v63, %v259_v58 }
  0x66   : > { %765 = vmatpush1.bf16.msra.mxu0 %v764_v29  ;;  %v269_v3 = vld [vmem:[#allocation5 + $0x170] sm:$0xff]  ;;  %v828_v4 = vpack.c.bf16 %v246_v61, %v243_v60  ;;  %v830_v7 = vpack.c.bf16 %v300_v1, %v297_v0  ;;  %v252_v9 = vld [vmem:[#allocation5 + $0xe8] sm:$0xff]  ;;  %v303_v12 = vld [vmem:[#allocation5 + $0x280] sm:$0xff] }
  0x67   : > { %767 = vmatprep.subr.bf16.mxu0 %v766_v34  ;;  %v265_v6 = vld [vmem:[#allocation5 + $0x150] sm:$0xff]  ;;  %v778_v10 = vpack.c.bf16 %v269_v3, %v266_v2  ;;  %v268_v11 = vld [vmem:[#allocation5 + $0x168] sm:$0xff]  ;;  %v306_v13 = vld [vmem:[#allocation5 + $0x298] sm:$0xff] }
  0x68   : > { %825 = vmatpush3.bf16.msra.mxu1 %v824_v55  ;;  %v249_v8 = vld [vmem:[#allocation5 + $0xd0] sm:$0xff]  ;;  %v272_v14 = vld [vmem:[#allocation5 + $0x188] sm:$0xff]  ;;  %v275_v15 = vld [vmem:[#allocation5 + $0x1a0] sm:$0xff]  ;;  %v780_v17 = vpack.c.bf16 %v268_v11, %v265_v6  ;;  %v834_v19 = vpack.c.bf16 %v306_v13, %v303_v12 }
  0x69   : > { %827 = vmatprep.subr.bf16.mxu1 %v826_v59  ;;  %v832_v16 = vpack.c.bf16 %v252_v9, %v249_v8  ;;  %v271_v18 = vld [vmem:[#allocation5 + $0x180] sm:$0xff]  ;;  %v258_v21 = vld [vmem:[#allocation5 + $0x118] sm:$0xff]  ;;  %v782_v22 = vpack.c.bf16 %v275_v15, %v272_v14  ;;  %v309_v24 = vld [vmem:[#allocation5 + $0x2b0] sm:$0xff] }
  0x6a   : > { %769 = vmatpush1.bf16.msra.mxu0 %v768_v43  ;;  %v255_v20 = vld [vmem:[#allocation5 + $0x100] sm:$0xff]  ;;  %v274_v23 = vld [vmem:[#allocation5 + $0x198] sm:$0xff]  ;;  %v312_v25 = vld [vmem:[#allocation5 + $0x2c8] sm:$0xff] }
  0x6b   : > { %771 = vmatprep.subr.bf16.mxu0 %v770_v47  ;;  %v278_v26 = vld [vmem:[#allocation5 + $0x1b8] sm:$0xff]  ;;  %v281_v27 = vld [vmem:[#allocation5 + $0x1d0] sm:$0xff]  ;;  %v836_v28 = vpack.c.bf16 %v258_v21, %v255_v20  ;;  %v208_v29 = vld [vmem:[%s1213_s9 + $0x8] sm:$0xff]  ;;  %v784_v30 = vpack.c.bf16 %v274_v23, %v271_v18  ;;  %v838_v32 = vpack.c.bf16 %v312_v25, %v309_v24 }
  0x6c   : > { %829 = vmatpush3.bf16.msra.mxu1 %v828_v4  ;;  %v277_v31 = vld [vmem:[#allocation5 + $0x1b0] sm:$0xff]  ;;  %v264_v34 = vld [vmem:[#allocation5 + $0x148] sm:$0xff]  ;;  %v786_v35 = vpack.c.bf16 %v281_v27, %v278_v26  ;;  %v315_v37 = vld [vmem:[#allocation5 + $0x2e0] sm:$0xff]  ;;  %513 = vmatprep.mubr.f32.mxu1 %v208_v29 }
  0x6d   : > { %831 = vmatprep.subr.bf16.mxu1 %v830_v7  ;;  %v261_v33 = vld [vmem:[#allocation5 + $0x130] sm:$0xff]  ;;  %v280_v36 = vld [vmem:[#allocation5 + $0x1c8] sm:$0xff]  ;;  %v318_v38 = vld [vmem:[#allocation5 + $0x2f8] sm:$0xff]  ;;  %400 = vmatprep.mubr.f32.mxu0 %v208_v29 }
  0x6e   : > { %773 = vmatpush1.bf16.msra.mxu0 %v772_v57  ;;  %v284_v39 = vld [vmem:[#allocation5 + $0x1e8] sm:$0xff]  ;;  %v287_v40 = vld [vmem:[#allocation5 + $0x200] sm:$0xff]  ;;  %v840_v41 = vpack.c.bf16 %v264_v34, %v261_v33  ;;  %v788_v42 = vpack.c.bf16 %v280_v36, %v277_v31  ;;  %v842_v43 = vpack.c.bf16 %v318_v38, %v315_v37  ;;  %v270_v45 = vld [vmem:[#allocation5 + $0x178] sm:$0xff] }
  0x6f   : > { %775 = vmatprep.subr.bf16.mxu0 %v774_v62  ;;  %v267_v44 = vld [vmem:[#allocation5 + $0x160] sm:$0xff]  ;;  %v790_v46 = vpack.c.bf16 %v287_v40, %v284_v39  ;;  %v286_v48 = vld [vmem:[#allocation5 + $0x1f8] sm:$0xff]  ;;  %v293_v50 = vld [vmem:[#allocation5 + $0x230] sm:$0xff] }
  0x70   : > { %833 = vmatpush3.bf16.msra.mxu1 %v832_v16  ;;  %v283_v47 = vld [vmem:[#allocation5 + $0x1e0] sm:$0xff]  ;;  %v290_v49 = vld [vmem:[#allocation5 + $0x218] sm:$0xff]  ;;  %v844_v51 = vpack.c.bf16 %v270_v45, %v267_v44  ;;  %v289_v54 = vld [vmem:[#allocation5 + $0x210] sm:$0xff] }
  0x71   : > { %835 = vmatprep.subr.bf16.mxu1 %v834_v19  ;;  %v792_v52 = vpack.c.bf16 %v286_v48, %v283_v47  ;;  %v794_v53 = vpack.c.bf16 %v293_v50, %v290_v49  ;;  %v292_v55 = vld [vmem:[#allocation5 + $0x228] sm:$0xff]  ;;  %v299_v57 = vld [vmem:[#allocation5 + $0x260] sm:$0xff]  ;;  %v210_v60 = vld [vmem:[%s1213_s9 + $0x18] sm:$0xff] }
  0x72   : > { %777 = vmatpush1.bf16.msra.mxu0 %v776_v5  ;;  %v296_v56 = vld [vmem:[#allocation5 + $0x248] sm:$0xff]  ;;  %v207_v58 = vld [vmem:[%s1213_s9] sm:$0xff]  ;;  %v796_v59 = vpack.c.bf16 %v292_v55, %v289_v54  ;;  %v298_v63 = vld [vmem:[#allocation5 + $0x258] sm:$0xff] }
  0x73   : > { %779 = vmatprep.subr.bf16.mxu0 %v778_v10  ;;  %v798_v61 = vpack.c.bf16 %v299_v57, %v296_v56  ;;  %v295_v62 = vld [vmem:[#allocation5 + $0x240] sm:$0xff]  ;;  %v302_v0 = vld [vmem:[#allocation5 + $0x278] sm:$0xff]  ;;  %v305_v1 = vld [vmem:[#allocation5 + $0x290] sm:$0xff] }
  0x74   : > { %837 = vmatpush3.bf16.msra.mxu1 %v836_v28  ;;  %v209_v2 = vld [vmem:[%s1213_s9 + $0x10] sm:$0xff]  ;;  %v800_v3 = vpack.c.bf16 %v298_v63, %v295_v62  ;;  %v212_v4 = vld [vmem:[%s1213_s9 + $0x28] sm:$0xff]  ;;  %v802_v5 = vpack.c.bf16 %v305_v1, %v302_v0  ;;  %v311_v9 = vld [vmem:[#allocation5 + $0x2c0] sm:$0xff] }
  0x75   : > { %839 = vmatprep.subr.bf16.mxu1 %v838_v32  ;;  %v301_v6 = vld [vmem:[#allocation5 + $0x270] sm:$0xff]  ;;  %v304_v7 = vld [vmem:[#allocation5 + $0x288] sm:$0xff]  ;;  %v211_v10 = vld [vmem:[%s1213_s9 + $0x20] sm:$0xff]  ;;  %v321_v32 = vlaneseq }
  0x76   : > { %781 = vmatpush1.bf16.msra.mxu0 %v780_v17  ;;  %v308_v8 = vld [vmem:[#allocation5 + $0x2a8] sm:$0xff]  ;;  %v804_v11 = vpack.c.bf16 %v304_v7, %v301_v6  ;;  %v214_v12 = vld [vmem:[%s1213_s9 + $0x38] sm:$0xff]  ;;  %v307_v14 = vld [vmem:[#allocation5 + $0x2a0] sm:$0xff] }
  0x77   : > { %783 = vmatprep.subr.bf16.mxu0 %v782_v22  ;;  %v806_v13 = vpack.c.bf16 %v311_v9, %v308_v8  ;;  %v310_v15 = vld [vmem:[#allocation5 + $0x2b8] sm:$0xff]  ;;  %v317_v17 = vld [vmem:[#allocation5 + $0x2f0] sm:$0xff]  ;;  %v216_v20 = vld [vmem:[%s1213_s9 + $0x48] sm:$0xff]  ;;  %v322_v33 = vshrl.u32 %v321_v32, 7 }
  0x78   : > { %841 = vmatpush3.bf16.msra.mxu1 %v840_v41  ;;  %v314_v16 = vld [vmem:[#allocation5 + $0x2d8] sm:$0xff]  ;;  %v213_v18 = vld [vmem:[%s1213_s9 + $0x30] sm:$0xff]  ;;  %v808_v19 = vpack.c.bf16 %v310_v15, %v307_v14  ;;  %v316_v23 = vld [vmem:[#allocation5 + $0x2e8] sm:$0xff] }
  0x79   : > { %843 = vmatprep.subr.bf16.mxu1 %v842_v43  ;;  %v810_v21 = vpack.c.bf16 %v317_v17, %v314_v16  ;;  %v313_v22 = vld [vmem:[#allocation5 + $0x2d0] sm:$0xff]  ;;  %v215_v24 = vld [vmem:[%s1213_s9 + $0x40] sm:$0xff]  ;;  %v218_v26 = vld [vmem:[%s1213_s9 + $0x58] sm:$0xff]  ;;  %v331_v34 = vsub.s32 2, %v322_v33 }
  0x7a   : > { %785 = vmatpush1.bf16.msra.mxu0 %v784_v30  ;;  %v812_v25 = vpack.c.bf16 %v316_v23, %v313_v22  ;;  %v217_v27 = vld [vmem:[%s1213_s9 + $0x50] sm:$0xff]  ;;  %v220_v28 = vld [vmem:[%s1213_s9 + $0x68] sm:$0xff]  ;;  %v219_v29 = vld [vmem:[%s1213_s9 + $0x60] sm:$0xff] }
  0x7b   : > { %787 = vmatprep.subr.bf16.mxu0 %v786_v35  ;;  %v222_v30 = vld [vmem:[%s1213_s9 + $0x78] sm:$0xff]  ;;  %v221_v31 = vld [vmem:[%s1213_s9 + $0x70] sm:$0xff]  ;;  %v319_v35 = vld [vmem:[%s1342_s2] sm:$0x7] }
  0x7c   : > { %845 = vmatpush3.bf16.msra.mxu1 %v844_v51  ;;  %v332_v37 = vrot.slane %v319_v35, %v331_v34  ;;  %v323_v51 = vsub.s32 0, %v322_v33 }
  0x7e   : > { %789 = vmatpush1.bf16.msra.mxu0 %v788_v42  ;;  %v1248_v57 = vrot.slane %v319_v35, %v323_v51 }
  0x7f   : > { %791 = vmatprep.subr.bf16.mxu0 %v790_v46  ;;  %514 = vmatmul.mubr.f32.vlgmr.msra.gmra.mrb[0].mxu1 %v207_v58 }
  0x80   : > { %518 = vmatprep.mubr.f32.mxu1 %v210_v60 }
  0x82   : > { %793 = vmatpush1.bf16.msra.mxu0 %v792_v52 }
  0x83   : > { %795 = vmatprep.subr.bf16.mxu0 %v794_v53  ;;  %519 = vmatmul.mubr.f32.gmra.mrb[2].mxu1 %v209_v2  ;;  %v327_v53 = vsub.s32 1, %v322_v33 }
  0x84   : > { %523 = vmatprep.mubr.f32.mxu1 %v212_v4 }
  0x86   : > { %797 = vmatpush1.bf16.msra.mxu0 %v796_v59  ;;  %v1251_v59 = vrot.slane %v319_v35, %v327_v53 }
  0x87   : > { %799 = vmatprep.subr.bf16.mxu0 %v798_v61  ;;  %524 = vmatmul.mubr.f32.gmra.mrb[4].mxu1 %v211_v10 }
  0x88   : > { %528 = vmatprep.mubr.f32.mxu1 %v214_v12 }
  0x8a   : > { %801 = vmatpush1.bf16.msra.mxu0 %v800_v3 }
  0x8b   : > { %803 = vmatprep.subr.bf16.mxu0 %v802_v5  ;;  %529 = vmatmul.mubr.f32.gmra.mrb[6].mxu1 %v213_v18 }
  0x8c   : > { %533 = vmatprep.mubr.f32.mxu1 %v216_v20 }
  0x8e   : > { %805 = vmatpush1.bf16.msra.mxu0 %v804_v11 }
  0x8f   : > { %807 = vmatprep.subr.bf16.mxu0 %v806_v13  ;;  %534 = vmatmul.mubr.f32.gmra.mrb[8].mxu1 %v215_v24 }
  0x90   : > { %538 = vmatprep.mubr.f32.mxu1 %v218_v26 }
  0x92   : > { %809 = vmatpush1.bf16.msra.mxu0 %v808_v19 }
  0x93   : > { %811 = vmatprep.subr.bf16.mxu0 %v810_v21  ;;  %539 = vmatmul.mubr.f32.gmra.mrb[10].mxu1 %v217_v27 }
  0x94   : > { %543 = vmatprep.mubr.f32.mxu1 %v220_v28 }
  0x96   : > { %813 = vmatpush1.bf16.msra.mxu0 %v812_v25 }
  0x97   : > { %544 = vmatmul.mubr.f32.gmra.mrb[12].mxu1 %v219_v29 }
  0x98   : > { %548 = vmatprep.mubr.f32.mxu1 %v222_v30 }
  0x99   : > { %401 = vmatmul.mubr.f32.vlgmr.msra.gmra.mrb[0].mxu0 %v207_v58 }
  0x9a   : > { %406 = vmatprep.mubr.f32.mxu0 %v210_v60 }
  0x9b   : > { %549 = vmatmul.mubr.f32.gmra.mrb[14].mxu1 %v221_v31 }
  0x9d   : > { %407 = vmatmul.mubr.f32.gmra.mrb[2].mxu0 %v209_v2 }
  0x9e   : > { %412 = vmatprep.mubr.f32.mxu0 %v212_v4 }
  0xa1   : > { %413 = vmatmul.mubr.f32.gmra.mrb[4].mxu0 %v211_v10 }
  0xa2   : > { %418 = vmatprep.mubr.f32.mxu0 %v214_v12 }
  0xa5   : > { %419 = vmatmul.mubr.f32.gmra.mrb[6].mxu0 %v213_v18 }
  0xa6   : > { %424 = vmatprep.mubr.f32.mxu0 %v216_v20 }
  0xa9   : > { %425 = vmatmul.mubr.f32.gmra.mrb[8].mxu0 %v215_v24 }
  0xaa   : > { %430 = vmatprep.mubr.f32.mxu0 %v218_v26 }
  0xad   : > { %431 = vmatmul.mubr.f32.gmra.mrb[10].mxu0 %v217_v27 }
  0xae   : > { %436 = vmatprep.mubr.f32.mxu0 %v220_v28 }
  0xb1   : > { %437 = vmatmul.mubr.f32.gmra.mrb[12].mxu0 %v219_v29 }
  0xb2   : > { %442 = vmatprep.mubr.f32.mxu0 %v222_v30 }
  0xb5   : > { %443 = vmatmul.mubr.f32.gmra.mrb[14].mxu0 %v221_v31 }
 0x152   : > { %v726_v36 = vpop.f32.mrb[0].mxu1 }
 0x153   : > { %v727_v38 = vpop.f32.mrb[1].mxu1 }
 0x154   : > { %v728_v39 = vadd.f32 %v727_v38, %v726_v36 }
 0x156   : > { %v516_v40 = vadd.f32 %v728_v39, %v332_v37  ;;  %v729_v41 = vpop.f32.mrb[2].mxu1 }
 0x157   : > { %v730_v42 = vpop.f32.mrb[3].mxu1 }
 0x158   : > { %556 = vst [vmem:[%s1243_s25 + $0x10] sm:$0xff] %v516_v40  ;;  %v731_v43 = vadd.f32 %v730_v42, %v729_v41 }
 0x15a   : > { %v521_v44 = vadd.f32 %v731_v43, %v332_v37  ;;  %v732_v45 = vpop.f32.mrb[4].mxu1 }
 0x15b   : > { %v733_v46 = vpop.f32.mrb[5].mxu1 }
 0x15c   : > { %559 = vst [vmem:[%s1243_s25 + $0x28] sm:$0xff] %v521_v44  ;;  %v734_v47 = vadd.f32 %v733_v46, %v732_v45 }
 0x15e   : > { %v526_v48 = vadd.f32 %v734_v47, %v332_v37  ;;  %v735_v49 = vpop.f32.mrb[6].mxu1 }
 0x15f   : > { %v736_v50 = vpop.f32.mrb[7].mxu1 }
 0x160   : > { %562 = vst [vmem:[%s1243_s25 + $0x40] sm:$0xff] %v526_v48  ;;  %v737_v52 = vadd.f32 %v736_v50, %v735_v49 }
 0x162   : > { %v531_v54 = vadd.f32 %v737_v52, %v332_v37  ;;  %v738_v55 = vpop.f32.mrb[8].mxu1 }
 0x163   : > { %v739_v56 = vpop.f32.mrb[9].mxu1 }
 0x164   : > { %565 = vst [vmem:[%s1243_s25 + $0x58] sm:$0xff] %v531_v54  ;;  %v740_v58 = vadd.f32 %v739_v56, %v738_v55 }
 0x166   : > { %v536_v60 = vadd.f32 %v740_v58, %v332_v37  ;;  %v741_v61 = vpop.f32.mrb[10].mxu1 }
 0x167   : > { %v742_v63 = vpop.f32.mrb[11].mxu1 }
 0x168   : > { %568 = vst [vmem:[%s1243_s25 + $0x70] sm:$0xff] %v536_v60  ;;  %v743_v2 = vadd.f32 %v742_v63, %v741_v61 }
 0x16a   : > { %v541_v4 = vadd.f32 %v743_v2, %v332_v37  ;;  %v744_v5 = vpop.f32.mrb[12].mxu1 }
 0x16b   : > { %v745_v7 = vpop.f32.mrb[13].mxu1 }
 0x16c   : > { %v402_v62 = vpop.f32.mrb[0].mxu0  ;;  %571 = vst [vmem:[%s1243_s25 + $0x88] sm:$0xff] %v541_v4  ;;  %v746_v10 = vadd.f32 %v745_v7, %v744_v5 }
 0x16d   : > { %v403_v0 = vadd.f32 %v402_v62, %v1248_v57  ;;  %v404_v1 = vpop.f32.mrb[1].mxu0 }
 0x16e   : > { %v405_v3 = vadd.f32 %v404_v1, %v1251_v59  ;;  %v546_v12 = vadd.f32 %v746_v10, %v332_v37  ;;  %v747_v13 = vpop.f32.mrb[14].mxu1 }
 0x16f   : > { %554 = vst [vmem:[%s1243_s25] sm:$0xff] %v403_v0  ;;  %v748_v15 = vpop.f32.mrb[15].mxu1 }
 0x170   : > { %555 = vst [vmem:[%s1243_s25 + $0x8] sm:$0xff] %v405_v3  ;;  %v408_v6 = vpop.f32.mrb[2].mxu0  ;;  %574 = vst [vmem:[%s1243_s25 + $0xa0] sm:$0xff] %v546_v12  ;;  %v749_v18 = vadd.f32 %v748_v15, %v747_v13 }
 0x171   : > { %v409_v8 = vadd.f32 %v408_v6, %v1248_v57  ;;  %v410_v9 = vpop.f32.mrb[3].mxu0 }
 0x172   : > { %v411_v11 = vadd.f32 %v410_v9, %v1251_v59  ;;  %v551_v20 = vadd.f32 %v749_v18, %v332_v37 }
 0x173   : > { %557 = vst [vmem:[%s1243_s25 + $0x18] sm:$0xff] %v409_v8 }
 0x174   : > { %558 = vst [vmem:[%s1243_s25 + $0x20] sm:$0xff] %v411_v11  ;;  %v414_v14 = vpop.f32.mrb[4].mxu0  ;;  %577 = vst [vmem:[%s1243_s25 + $0xb8] sm:$0xff] %v551_v20 }
 0x175   : > { %v415_v16 = vadd.f32 %v414_v14, %v1248_v57  ;;  %v416_v17 = vpop.f32.mrb[5].mxu0 }
 0x176   : > { %v417_v19 = vadd.f32 %v416_v17, %v1251_v59 }
 0x177   : > { %560 = vst [vmem:[%s1243_s25 + $0x30] sm:$0xff] %v415_v16 }
 0x178   : > { %561 = vst [vmem:[%s1243_s25 + $0x38] sm:$0xff] %v417_v19  ;;  %v420_v21 = vpop.f32.mrb[6].mxu0 }
 0x179   : > { %v421_v22 = vadd.f32 %v420_v21, %v1248_v57  ;;  %v422_v23 = vpop.f32.mrb[7].mxu0 }
 0x17a   : > { %v423_v24 = vadd.f32 %v422_v23, %v1251_v59 }
 0x17b   : > { %563 = vst [vmem:[%s1243_s25 + $0x48] sm:$0xff] %v421_v22 }
 0x17c   : > { %564 = vst [vmem:[%s1243_s25 + $0x50] sm:$0xff] %v423_v24  ;;  %v426_v25 = vpop.f32.mrb[8].mxu0 }
 0x17d   : > { %v427_v26 = vadd.f32 %v426_v25, %v1248_v57  ;;  %v428_v27 = vpop.f32.mrb[9].mxu0 }
 0x17e   : > { %v429_v28 = vadd.f32 %v428_v27, %v1251_v59 }
 0x17f   : > { %566 = vst [vmem:[%s1243_s25 + $0x60] sm:$0xff] %v427_v26 }
 0x180   : > { %567 = vst [vmem:[%s1243_s25 + $0x68] sm:$0xff] %v429_v28  ;;  %v432_v29 = vpop.f32.mrb[10].mxu0 }
 0x181   : > { %v433_v30 = vadd.f32 %v432_v29, %v1248_v57  ;;  %v434_v31 = vpop.f32.mrb[11].mxu0 }
 0x182   : > { %v435_v32 = vadd.f32 %v434_v31, %v1251_v59 }
 0x183   : > { %569 = vst [vmem:[%s1243_s25 + $0x78] sm:$0xff] %v433_v30 }
 0x184   : > { %570 = vst [vmem:[%s1243_s25 + $0x80] sm:$0xff] %v435_v32  ;;  %v438_v33 = vpop.f32.mrb[12].mxu0 }
 0x185   : > { %v439_v34 = vadd.f32 %v438_v33, %v1248_v57  ;;  %v440_v35 = vpop.f32.mrb[13].mxu0 }
 0x186   : > { %v441_v36 = vadd.f32 %v440_v35, %v1251_v59 }
 0x187   : > { %572 = vst [vmem:[%s1243_s25 + $0x90] sm:$0xff] %v439_v34 }
 0x188   : > { %573 = vst [vmem:[%s1243_s25 + $0x98] sm:$0xff] %v441_v36  ;;  %v444_v37 = vpop.f32.mrb[14].mxu0 }
 0x189   : > { %v445_v38 = vadd.f32 %v444_v37, %v1248_v57  ;;  %v446_v39 = vpop.f32.mrb[15].mxu0 }
 0x18a   : > { %v447_v40 = vadd.f32 %v446_v39, %v1251_v59 }
 0x18b   : > { %575 = vst [vmem:[%s1243_s25 + $0xa8] sm:$0xff] %v445_v38 }
 0x18c   : > { %576 = vst [vmem:[%s1243_s25 + $0xb0] sm:$0xff] %v447_v40 }
 0x18d   : > { %982 = shalt.err (!%p979_p7)
}
 0x18e   : > { %s983_s22 = scalar_lea.hbm %s1291_s27, 3072  ;;  %s987_s9 = scalar_lea.hbm %s1343_s3, 6144 }
 0x18f   : > { %p984_p9 = scmp.ne.s32.totalorder %s1291_s27, %s983_s22  ;;  %p988_p5 = scmp.lt.u32.totalorder %s1291_s27, %s1343_s3 }
 0x190   : > { %p989_p11 = scmp.lt.u32.totalorder %s987_s9, %s983_s22  ;;  %p991_p4 = scmp.lt.u32.totalorder %s983_s22, %s1291_s27 }
 0x191   : > { %p985_p2 = pnand %p984_p9, %p1161_p12 }
 0x192   : > { %p990_p1 = por %p989_p11, %p988_p5 }
 0x193   : > { %p986_p0 = pneg %p985_p2 }
 0x194   : > { %p992_p6 = por %p991_p4, %p990_p1 }
 0x196   : > { %p993_p8 = pnand %p992_p6, %p986_p0 }
 0x198   : > { %996 = shalt.err (!%p993_p8)
}
 0x199   : > { %s1048_s4 = smov 384   ;;  %s1049_s25 = smov 24  }
 0x19a   : > { %854 = dma.vmem_to_hbm [thread:$0]  (%p1161_p12), %s1293_s5, 3072, %s1291_s27, %s579_s16, %s1048_s4, %s1048_s4, %s1049_s25  }
 0x19b PF: > { %s608_s26 = sand.u32 1, %s1027_s12   ;;  %p1358_p10 = scmp.ne.s32.totalorder %s1348_s19, 0 }
 0x19c   : > { %p1359_p13 = scmp.ge.s32.totalorder %s1039_s15, 2  ;;  %s609_s10 = scalar_lea.sflag [#allocation4], %s608_s26 }
 0x19e   : > { %p865_p3 = pnand %p1359_p13, %p1358_p10 }
 0x1a0   : > { %1022 = dma.done.wait (!%p865_p3), %s609_s10, 3072  }
 0x1a1   : > { %1024 = vsyncadd (!%p865_p3), %s609_s10, 4294964224  ;;  %p17_p7 = scmp.ge.s32.totalorder %s1126_s24, 4   ;;  %s1360_s12 = smov %s1031_s13 }
 0x1a2   : > { %s1361_s13 = smov %s1035_s14  ;;  %s1362_s14 = smov %s1157_s17 }
 0x1a3   : > { %s1363_s15 = smov %s1126_s24  ;;  %19 = sbr.rel (!%p17_p7) target bundleno = 6 (0x6), region = 81 }
 0x1aa   :  { %614 = vsyncpa [#allocation3], 1 }
 0x1ab   :  { %616 = vsyncpa [#allocation3 + $0x1], 1 }
 0x1ac   :  { %617 = vsyncpa [#allocation6], 1 }
 0x1ad   :  { %618 = vsyncpa [#allocation4], 1 }
 0x1ae   :  { %620 = vsyncpa [#allocation4 + $0x1], 1 }

</bundles_post_ra>
